<compile_context>
chip_gen: v7x
topology: tpu7x:2x2x1
jax: 0.10.0
libtpu: 0.0.40
codegen_flags: <defaults>
</compile_context>

<pallas_src>
import math
import functools

import numpy as np
import jax
import jax.numpy as jnp
from jax import lax
from jax.experimental import pallas as pl
from jax.experimental.pallas import tpu as pltpu


def _cdiv(a, b):
    return -(-a // b)


def _sinpos_kernel(freq_ref, off_ref, tok_ref, out_ref, *, padding_idx: int, left_pad: bool):
    """One grid step.

    freq_ref : [1, D]           f32  inverse frequencies, tiled twice ([f | f])
    off_ref  : [TB, 1]          f32  per-row position offset (only read if left_pad)
    tok_ref  : [TB, TS]         i32  token ids
    out_ref  : [TB, TS, D]      sinusoidal embeddings
    """
    tile_b, tile_s = tok_ref.shape
    D = out_ref.shape[-1]
    half = D // 2
    aligned = (half % 128 == 0)

    tok = tok_ref[...]                                               # [TB, TS]
    maskf = (tok != padding_idx).astype(jnp.float32)[:, :, None]     # [TB, TS, 1]

    # Absolute position of row 0 of this seq tile (positions start at padding_idx+1).
    base = pl.program_id(1) * tile_s + (padding_idx + 1)
    pos = (lax.broadcasted_iota(jnp.int32, (tile_s, 1), 0) + base).astype(jnp.float32)  # [TS,1]

    if left_pad:
        off = off_ref[...]                                           # [TB, 1] (= nonpad - S)

    if aligned:
        # Two unmasked lane-dense half-D stores; no concatenate, no relayout.
        freq = freq_ref[:, :half]                                    # [1, half]
        ang = pos * freq                                             # [TS, half]
        sA = jnp.sin(ang)
        cA = jnp.cos(ang)
        if left_pad:
            # angle-addition: sin(A+O) = sA*cO + cA*sO ; cos(A+O) = cA*cO - sA*sO
            angO = off * freq                                        # [TB, half]
            sO = jnp.sin(angO)[:, None, :]                           # [TB, 1, half]
            cO = jnp.cos(angO)[:, None, :]
            sin_out = (sA[None] * cO + cA[None] * sO) * maskf        # [TB, TS, half]
            cos_out = (cA[None] * cO - sA[None] * sO) * maskf
        else:
            sin_out = sA[None, :, :] * maskf                         # broadcast over batch
            cos_out = cA[None, :, :] * maskf
        out_ref[:, :, :half] = sin_out.astype(out_ref.dtype)
        out_ref[:, :, half:] = cos_out.astype(out_ref.dtype)
    else:
        # Small / unaligned D: one full-D lane-dense store.  The sin-vs-cos halves
        # are picked with a lane-index select on small [TS,D]/[TB,D] slabs (no
        # lane concatenate, no phase-shift accuracy loss).
        freq = freq_ref[...]                                         # [1, D] = [f | f]
        is_sin = lax.broadcasted_iota(jnp.int32, (1, D), 1) < half   # [1, D]
        ang = pos * freq                                             # [TS, D]
        sA = jnp.sin(ang)
        cA = jnp.cos(ang)
        F = jnp.where(is_sin, sA, cA)                                # f(A): sin lower / cos upper
        if left_pad:
            G = jnp.where(is_sin, cA, -sA)                           # d/dO combination term
            angO = off * freq                                        # [TB, D]
            sO = jnp.sin(angO)[:, None, :]
            cO = jnp.cos(angO)[:, None, :]
            res = (F[None] * cO + G[None] * sO) * maskf              # [TB, TS, D]
        else:
            res = F[None, :, :] * maskf
        out_ref[...] = res.astype(out_ref.dtype)


def _vmem_capacity_bytes():
    try:
        return int(pltpu.get_tpu_info().vmem_capacity_bytes)
    except Exception:
        return None


def _default_block_budget():
    """Generation-aware output-block budget (f32 bytes): ~16 MiB on v5e/v6e, ~8 MiB on v7x."""
    cap = _vmem_capacity_bytes()
    if cap is None:
        return 8 << 20
    return max(4 << 20, min(cap // 8, 16 << 20))


def _choose_tiles(B, S, D, budget_bytes, min_blocks):
    """Pick (tile_b, tile_s).  Constraints honoured:
      tokens block (tile_b, tile_s): tile_b % 8 == 0 or == B; tile_s % 128 == 0 or == S
      output block (tile_b, tile_s, D): tile_s % 8 == 0 or == S; D is the full dim.
    Ragged last blocks (cdiv grid) are used instead of padding the arrays."""
    row_bytes = D * 4   # budget is accounted in f32 bytes (temporaries are f32)

    # Batch tile: keep the full batch (enables the batch-broadcast of the sin/cos
    # slab) unless even one 128-row seq slab at full batch busts the budget.
    min_s = min(S, 128)
    if B <= 8 or B * min_s * row_bytes <= budget_bytes:
        tile_b = B
    else:
        tile_b = max(8, min(B, (budget_bytes // (min_s * row_bytes)) // 8 * 8))
    nb = _cdiv(B, tile_b)

    # Seq tile: the biggest multiple of 128 (or all of S) that fits the budget.
    if S <= 128 or tile_b * S * row_bytes <= budget_bytes:
        tile_s = S
    else:
        rows = budget_bytes // (tile_b * row_bytes)
        tile_s = max(128, (rows // 128) * 128)
        tile_s = min(tile_s, _cdiv(S, 128) * 128)
    ns = _cdiv(S, tile_s)

    # Megacore / pipelining: never let the grid collapse to a single (or tiny)
    # number of blocks when S is big enough to split along 128-row boundaries.
    if nb * ns < min_blocks and S > 128:
        want_ns = _cdiv(min_blocks, nb)
        tile_s = min(tile_s, 128 * max(1, _cdiv(S, 128 * want_ns)))
        ns = _cdiv(S, tile_s)

    return tile_b, tile_s


def sinusoidal_positional_embedding(tokens, embedding_dim: int, padding_idx: int = 0,
                                    left_pad: bool = False, *,
                                    out_dtype=jnp.float32,
                                    vmem_block_budget_bytes=None,
                                    min_grid_blocks: int = 4):
    """tokens: int [bsz, seq_len] -> [bsz, seq_len, embedding_dim] (out_dtype, f32 default)."""
    # TODO(synk): odd embedding_dim (fairseq appends a zero column) not supported.
    assert embedding_dim % 2 == 0, "odd embedding_dim not supported in this kernel"
    B, S = tokens.shape
    D = embedding_dim
    half = D // 2
    tokens = tokens.astype(jnp.int32)

    # Per-row position offset for left padding (computed over the FULL row here,
    # so the kernel can tile along S freely).
    if left_pad:
        nonpad = jnp.sum((tokens != padding_idx).astype(jnp.int32), axis=1)
        offsets = (nonpad - S).astype(jnp.float32)[:, None]           # [B, 1]
    else:
        offsets = jnp.zeros((B, 1), jnp.float32)

    # Compile-time inverse-frequency table, tiled twice -> [1, D] (guard half == 1).
    scale = -math.log(10000.0) / max(half - 1, 1)
    inv_half = np.exp(np.arange(half, dtype=np.float32) * scale)
    inv_freq = jnp.asarray(np.concatenate([inv_half, inv_half]).reshape(1, D))

    budget = vmem_block_budget_bytes if vmem_block_budget_bytes is not None \
        else _default_block_budget()
    tile_b, tile_s = _choose_tiles(B, S, D, budget, min_grid_blocks)
    grid = (_cdiv(B, tile_b), _cdiv(S, tile_s))

    out_itemsize = jnp.dtype(out_dtype).itemsize
    block_f32 = tile_b * tile_s * D * 4
    out_block = tile_b * tile_s * D * out_itemsize
    # ~2x double-buffered out block + ~3 blocks of f32 temporaries + slack.
    vmem_limit = max(2 * out_block + 3 * block_f32 + (4 << 20), 32 << 20)
    cap = _vmem_capacity_bytes()
    vmem_limit = int(min(vmem_limit, (cap if cap else (128 << 20)) * 3 // 4))

    cost = pl.CostEstimate(
        flops=int(4 * B * S * D),
        transcendentals=int(grid[0] * grid[1] * 2 * half
                            * (tile_s + (tile_b if left_pad else 0))),
        bytes_accessed=int(B * S * D * out_itemsize + B * S * 4 + B * 4 + D * 4),
    )

    kernel = functools.partial(_sinpos_kernel, padding_idx=padding_idx, left_pad=left_pad)
    out = pl.pallas_call(
        kernel,
        out_shape=jax.ShapeDtypeStruct((B, S, D), out_dtype),
        grid=grid,
        in_specs=[
            pl.BlockSpec((1, D), lambda b, s: (0, 0)),            # inv_freq (tiny, replicated)
            pl.BlockSpec((tile_b, 1), lambda b, s: (b, 0)),       # left-pad offsets
            pl.BlockSpec((tile_b, tile_s), lambda b, s: (b, s)),  # tokens (ragged tail OK)
        ],
        out_specs=pl.BlockSpec((tile_b, tile_s, D), lambda b, s: (b, s, 0)),
        compiler_params=pltpu.CompilerParams(
            dimension_semantics=("parallel", "parallel"),
            vmem_limit_bytes=vmem_limit),
        cost_estimate=cost,
    )(inv_freq, offsets, tokens)
    return out


# --- pure-JAX reference (mirrors the PyTorch module exactly) -----------------
def _reference(tokens, embedding_dim, padding_idx=0, left_pad=False):
    B, S = tokens.shape
    max_pos = padding_idx + 1 + S
    half = embedding_dim // 2
    e = math.log(10000.0) / max(half - 1, 1)
    freqs = jnp.exp(jnp.arange(half, dtype=jnp.float32) * -e)
    pos_grid = jnp.arange(max_pos, dtype=jnp.float32)[:, None] * freqs[None, :]
    table = jnp.concatenate([jnp.sin(pos_grid), jnp.cos(pos_grid)], axis=1)
    table = table.at[padding_idx, :].set(0.0)

    mask = tokens != padding_idx
    positions = padding_idx + 1 + jnp.arange(S, dtype=jnp.int32)[None, :]
    positions = jnp.broadcast_to(positions, (B, S))
    if left_pad:
        positions = positions - S + jnp.sum(mask.astype(jnp.int32), axis=1, keepdims=True)
    positions = jnp.where(mask, positions, padding_idx)
    return table[positions.reshape(-1)].reshape(B, S, embedding_dim)


if __name__ == "__main__":
    padding_idx = 0

    # 1) small, unaligned half (D=32 -> half=16), right padding, single block.
    bsz, seq_len, dim = 2, 8, 32
    toks = jax.random.randint(jax.random.PRNGKey(0), (bsz, seq_len), 1, 20, dtype=jnp.int32)
    toks = toks.at[1, 5:].set(padding_idx)
    out = jax.block_until_ready(
        sinusoidal_positional_embedding(toks, dim, padding_idx, False))
    ref = _reference(toks, dim, padding_idx, False)
    assert out.shape == (bsz, seq_len, dim) and out.dtype == jnp.float32
    assert jnp.allclose(out, ref, atol=1e-4, rtol=1e-4)

    # 2) small, unaligned half, LEFT padding (angle-addition identity path).
    toks_l = jax.random.randint(jax.random.PRNGKey(1), (bsz, seq_len), 1, 20, dtype=jnp.int32)
    toks_l = toks_l.at[0, :3].set(padding_idx)
    out_l = jax.block_until_ready(
        sinusoidal_positional_embedding(toks_l, dim, padding_idx, True))
    ref_l = _reference(toks_l, dim, padding_idx, True)
    assert jnp.allclose(out_l, ref_l, atol=1e-4, rtol=1e-4)

    # 3) aligned half (D=256), S=300: ragged seq tiling (grid (1,3), partial last
    #    block) with the exact-shape output -- no wrapper pad / slice.
    toks_t = jax.random.randint(jax.random.PRNGKey(2), (2, 300), 1, 50, dtype=jnp.int32)
    toks_t = toks_t.at[1, 250:].set(padding_idx)
    out_t = jax.block_until_ready(
        sinusoidal_positional_embedding(toks_t, 256, padding_idx, False))
    ref_t = _reference(toks_t, 256, padding_idx, False)
    assert out_t.shape == (2, 300, 256)
    assert jnp.allclose(out_t, ref_t, atol=1e-4, rtol=1e-4)

    # 4) aligned half, LEFT padding, explicit small block budget (budget-limited tiling).
    toks_tl = jax.random.randint(jax.random.PRNGKey(3), (2, 300), 1, 50, dtype=jnp.int32)
    toks_tl = toks_tl.at[0, :40].set(padding_idx)
    out_tl = jax.block_until_ready(
        sinusoidal_positional_embedding(toks_tl, 256, padding_idx, True,
                                        vmem_block_budget_bytes=256 * 1024))
    ref_tl = _reference(toks_tl, 256, padding_idx, True)
    assert jnp.allclose(out_tl, ref_tl, atol=1e-4, rtol=1e-4)

    # 5) opt-in bf16 output (halves writeback bytes), loose tolerance.
    out_b = jax.block_until_ready(
        sinusoidal_positional_embedding(toks_t, 256, padding_idx, False,
                                        out_dtype=jnp.bfloat16))
    assert out_b.dtype == jnp.bfloat16
    assert jnp.allclose(out_b.astype(jnp.float32), ref_t, atol=2e-2, rtol=2e-2)

    print("KERNEL_OK")
</pallas_src>

<mosaic_0001>
module attributes {stable_mosaic.version = 11 : i64} {
  func.func @_sinpos_kernel(%arg0: i32, %arg1: i32, %arg2: memref<1x32xf32, #tpu.memory_space<vmem>>, %arg3: memref<2x1xf32, #tpu.memory_space<vmem>>, %arg4: memref<2x8xi32, #tpu.memory_space<vmem>>, %arg5: memref<2x8x32xf32, #tpu.memory_space<vmem>>) attributes {dimension_semantics = [#tpu.dimension_semantics<parallel>, #tpu.dimension_semantics<parallel>], iteration_bounds = array<i64: 1, 1>, scalar_prefetch = 0 : i64, scratch_operands = 0 : i64, tpu.core_type = #tpu.core_type<tc>, window_params = [{pipeline_mode = #tpu.pipeline_mode<synchronous>, transform_indices = @transform_0, window_bounds = array<i64: 1, 32>}, {transform_indices = @transform_1, window_bounds = array<i64: 2, 1>}, {transform_indices = @transform_2, window_bounds = array<i64: 2, 8>}, {transform_indices = @transform_3, window_bounds = array<i64: 2, 8, 32>}]} {
    %c0 = arith.constant 0 : index
    %c0_0 = arith.constant 0 : index
    %0 = vector.load %arg4[%c0, %c0_0] : memref<2x8xi32, #tpu.memory_space<vmem>>, vector<2x8xi32>
    %c0_i32 = arith.constant 0 : i32
    %1 = vector.broadcast %c0_i32 : i32 to vector<2x8xi32>
    %2 = arith.cmpi ne, %0, %1 : vector<2x8xi32>
    %3 = arith.extui %2 : vector<2x8xi1> to vector<2x8xi32>
    %4 = arith.sitofp %3 : vector<2x8xi32> to vector<2x8xf32>
    %5 = vector.shape_cast %4 : vector<2x8xf32> to vector<2x8x1xf32>
    %c8_i32 = arith.constant 8 : i32
    %6 = arith.muli %arg1, %c8_i32 : i32
    %c1_i32 = arith.constant 1 : i32
    %7 = arith.addi %6, %c1_i32 : i32
    %8 = tpu.iota {dimensions = array<i32: 0>} : vector<8x1xi32>
    %9 = vector.broadcast %7 : i32 to vector<8x1xi32>
    %10 = arith.addi %8, %9 : vector<8x1xi32>
    %11 = arith.sitofp %10 : vector<8x1xi32> to vector<8x1xf32>
    %c0_1 = arith.constant 0 : index
    %c0_2 = arith.constant 0 : index
    %12 = vector.load %arg2[%c0_1, %c0_2] : memref<1x32xf32, #tpu.memory_space<vmem>>, vector<1x32xf32>
    %13 = tpu.iota {dimensions = array<i32: 1>} : vector<1x32xi32>
    %c16_i32 = arith.constant 16 : i32
    %14 = vector.broadcast %c16_i32 : i32 to vector<1x32xi32>
    %15 = arith.cmpi slt, %13, %14 : vector<1x32xi32>
    %16 = vector.broadcast %11 : vector<8x1xf32> to vector<8x32xf32>
    %17 = vector.broadcast %12 : vector<1x32xf32> to vector<8x32xf32>
    %18 = arith.mulf %16, %17 : vector<8x32xf32>
    %19 = math.sin %18 : vector<8x32xf32>
    %20 = math.cos %18 : vector<8x32xf32>
    %21 = vector.shape_cast %15 : vector<1x32xi1> to vector<1x32xi1>
    %22 = vector.broadcast %21 : vector<1x32xi1> to vector<8x32xi1>
    %23 = arith.select %22, %19, %20 : vector<8x32xi1>, vector<8x32xf32>
    %24 = vector.shape_cast %23 : vector<8x32xf32> to vector<1x8x32xf32>
    %25 = vector.broadcast %24 : vector<1x8x32xf32> to vector<2x8x32xf32>
    %26 = vector.broadcast %5 : vector<2x8x1xf32> to vector<2x8x32xf32>
    %27 = arith.mulf %25, %26 : vector<2x8x32xf32>
    %c0_3 = arith.constant 0 : index
    %c0_4 = arith.constant 0 : index
    %c0_5 = arith.constant 0 : index
    %28 = vector.load %arg5[%c0_3, %c0_4, %c0_5] : memref<2x8x32xf32, #tpu.memory_space<vmem>>, vector<2x8x32xf32>
    tpu.vector_store %arg5[%c0_3, %c0_4, %c0_5], %27 {strides = array<i32>} : memref<2x8x32xf32, #tpu.memory_space<vmem>>, vector<2x8x32xf32>,
    return
  }
  func.func @transform_0(%arg0: i32, %arg1: i32) -> (i32, i32) {
    %c0_i32 = arith.constant 0 : i32
    %c0_i32_0 = arith.constant 0 : i32
    %c0_i32_1 = arith.constant 0 : i32
    return %c0_i32, %c0_i32_0 : i32, i32
  }
  func.func @transform_1(%arg0: i32, %arg1: i32) -> (i32, i32) {
    %c0_i32 = arith.constant 0 : i32
    %c0_i32_0 = arith.constant 0 : i32
    return %arg0, %c0_i32 : i32, i32
  }
  func.func @transform_2(%arg0: i32, %arg1: i32) -> (i32, i32) {
    %c0_i32 = arith.constant 0 : i32
    return %arg0, %arg1 : i32, i32
  }
  func.func @transform_3(%arg0: i32, %arg1: i32) -> (i32, i32, i32) {
    %c0_i32 = arith.constant 0 : i32
    %c0_i32_0 = arith.constant 0 : i32
    return %arg0, %arg1, %c0_i32 : i32, i32, i32
  }
}

</mosaic_0001>

<bundles_post_ra>
// kernel: tpu_custom_call.1
= control target key start
LH: loop header
LB: loop body
LE: loop exit
PB: predicated region body
PF: predicated region fallthrough
CT: control target
= control target key end

     0   :  { %v19_v1 = vlaneseq  ;;  %v334_v3 = vmov 0.0   ;;  %s405_s0 = inlined_call_operand.vmem [shape: f32[1,32], index: 0, kind: input, shape index: {}]   ;;  %s406_s1 = inlined_call_operand.vmem [shape: f32[2,1], index: 1, kind: input, shape index: {}]   ;;  %s407_s2 = inlined_call_operand.vmem [shape: s32[2,8], index: 2, kind: input, shape index: {}]   ;;  %s408_s3 = inlined_call_operand.hbm [shape: f32[2,8,32], index: 3, kind: output, shape index: {}]  }
   0x1   :  { %v15_v0 = vld [vmem:[%s407_s2] sm:$0x3] }
   0x2   :  { %vm16_vm0 = vcmp.ne.s32.totalorder %v15_v0, 0  ;;  %v20_v2 = vshrl.u32 %v19_v1, 7 }
   0x3   :  { %v282_v4 = vsel %vm16_vm0, 1.0, %v334_v3 }
   0x4   :  { %v21_v5 = vsub.s32 0, %v20_v2  ;;  %v38_v6 = vadd.s32 1, %v20_v2  ;;  %v28_v7 = vsub.s32 1, %v20_v2 }
   0x5   :  { %8 = vsyncpa [#allocation3], 0  ;;  %v283_v8 = vld [vmem:[%s405_s0] ss:$0 sm:$0xff]  ;;  %v335_v24 = vmov 683565275  }
   0x6   :  { %v22_v9 = vrot.slane %v282_v4, %v21_v5  ;;  %v39_v10 = vcvt.s32.f32 %v38_v6  ;;  %v29_v12 = vrot.slane %v282_v4, %v28_v7  ;;  %v336_v26 = vmov 2475754826   ;;  %s341_s0 = smov [#allocation2]  }
   0x7   :  { %v337_v28 = vmov 2131351028   ;;  %v338_v30 = vmov 2102212464   ;;  %v339_v32 = vmov 920167782  }
   0x8   :  { %v371_v11 = vmul.f32 %v283_v8, %v39_v10  ;;  %24 = vbcast.lane.b32.xlu0 %v22_v9, 256  ;;  %v340_v39 = vmov 1326507024   ;;  %s271_s2 = sshll.u32 %s341_s0, 4  ;;  %s272_s2 = int_to_ptr.vmem [resolvable:$true] %s271_s2 }
   0x9   :  { %s310_s15 = scalar_lea.vmem %s272_s2, 256  ;;  %p315_p1 = scmp.lt.s32.totalorder %s272_s2, %s272_s2 }
   0xa   :  { %v54_v13 = vand.u32 2139095040, %v371_v11  ;;  %v51_v15 = vand.u32 2147483647, %v371_v11  ;;  %vm53_vm8 = vcmp.lt.s32.totalorder %v371_v11, 0  ;;  %vm143_vm0 = vweird.f32 %v371_v11  ;;  %p311_p0 = scmp.ne.s32.totalorder %s272_s2, %s310_s15  ;;  %p316_p2 = scmp.lt.s32.totalorder %s310_s15, %s310_s15 }
   0xc   :  { %v55_v14 = vshrl.u32 %v54_v13, 23  ;;  %31 = vbcast.lane.b32.xlu0 %v29_v12, 256  ;;  %v58_v18 = vand.u32 8388607, %v51_v15  ;;  %vm52_vm9 = vcmp.le.f32.partialorder %v51_v15, 0.7853982  ;;  %p317_p3 = por %p316_p2, %p315_p1 }
   0xe   :  { %v284_v16 = vadd.s32 4294967169, %v55_v14  ;;  %v59_v22 = vor.u32 8388608, %v58_v18  ;;  %p318_p4 = pnand %p317_p3, %p311_p0 }
  0x10   :  { %v61_v17 = vadd.s32 1, %v284_v16  ;;  %v99_v41 = vshll.u32 %v59_v22, 8 }
  0x12   :  { %vm62_vm1 = vcmp.gt.s32.totalorder %v61_v17, 0 }
  0x13   :  { %v63_v19 = vsel %vm62_vm1, %v61_v17, 0 }
  0x14   :  { %v65_v20 = vand.u32 31, %v63_v19  ;;  %v64_v21 = vshrl.u32 %v63_v19, 5 }
  0x16   :  { %v66_v23 = vsub.s32 32, %v65_v20  ;;  %v68_v25 = vshll.u32 %v335_v24, %v65_v20  ;;  %v71_v27 = vshll.u32 %v336_v26, %v65_v20  ;;  %v74_v29 = vshll.u32 %v337_v28, %v65_v20 }
  0x17   :  { %v77_v31 = vshll.u32 %v338_v30, %v65_v20  ;;  %v80_v33 = vshll.u32 %v339_v32, %v65_v20  ;;  %vm83_vm2 = vcmp.lt.s32.totalorder %v64_v21, 1  ;;  %vm86_vm3 = vcmp.lt.s32.totalorder %v64_v21, 4 }
  0x18   :  { %v67_v34 = vshrl.u32 %v335_v24, %v66_v23  ;;  %v69_v35 = vshrl.u32 %v336_v26, %v66_v23  ;;  %v72_v36 = vshrl.u32 %v337_v28, %v66_v23  ;;  %v75_v37 = vshrl.u32 %v338_v30, %v66_v23 }
  0x19   :  { %v78_v38 = vshrl.u32 %v339_v32, %v66_v23  ;;  %v81_v40 = vshrl.u32 %v340_v39, %v66_v23  ;;  %vm84_vm4 = vcmp.lt.s32.totalorder %v64_v21, 2  ;;  %vm85_vm5 = vcmp.lt.s32.totalorder %v64_v21, 3 }
  0x1a   :  { %v70_v42 = vor.u32 %v69_v35, %v68_v25  ;;  %v73_v43 = vor.u32 %v72_v36, %v71_v27  ;;  %v76_v44 = vor.u32 %v75_v37, %v74_v29  ;;  %v42_v37 = vand.u32 127, %v19_v1 }
  0x1b   :  { %v79_v45 = vor.u32 %v78_v38, %v77_v31  ;;  %v82_v46 = vor.u32 %v81_v40, %v80_v33 }
  0x1c   :  { %v87_v47 = vsel %vm83_vm2, %v67_v34, %v70_v42  ;;  %v88_v48 = vsel %vm86_vm3, %v76_v44, 2102212464  ;;  %v91_v49 = vsel %vm83_vm2, %v70_v42, %v73_v43  ;;  %v95_v50 = vsel %vm83_vm2, %v73_v43, %v76_v44 }
  0x1d   :  { %v89_v51 = vsel %vm85_vm5, %v73_v43, %v88_v48  ;;  %v92_v52 = vsel %vm86_vm3, %v79_v45, 920167782  ;;  %v96_v53 = vsel %vm86_vm3, %v82_v46, 1326507024  ;;  %vm43_vm1 = vcmp.lt.s32.totalorder %v42_v37, 16 }
  0x1e   :  { %v93_v54 = vsel %vm85_vm5, %v76_v44, %v92_v52  ;;  %v97_v55 = vsel %vm85_vm5, %v79_v45, %v96_v53  ;;  %v90_v56 = vsel %vm84_vm4, %v87_v47, %v89_v51  ;;  %vm263_vm2 = vcmask 261120  }
  0x1f   :  { %v94_v57 = vsel %vm84_vm4, %v91_v49, %v93_v54  ;;  %v98_v58 = vsel %vm84_vm4, %v95_v50, %v97_v55  ;;  %v106_v63 = vmul.u32 %v99_v41, %v90_v56 }
  0x20   :  { %v377_v59 = vmul.u32.u64.low %v99_v41, %v98_v58  ;;  %v378_v60 = vmul.u32.u64.high %v99_v41, %v98_v58, %v377_v59  ;;  %v380_v61 = vmul.u32.u64.low %v99_v41, %v94_v57  ;;  %v381_v62 = vmul.u32.u64.high %v99_v41, %v94_v57, %v380_v61 }
  0x22   :  { %vm108_vm6 = vc.u32 %v378_v60, %v380_v61  ;;  %v109_v0 = vadd.s32 1, %v381_v62  ;;  %v107_v13 = vadd.s32 %v380_v61, %v378_v60 }
  0x24   :  { %v110_v2 = vsel %vm108_vm6, %v109_v0, %v381_v62 }
  0x25   :  { %v111_v3 = vadd.s32 %v110_v2, %v106_v63 }
  0x27   :  { %v112_v4 = vadd.s32 536870912, %v111_v3 }
  0x29   :  { %v113_v5 = vshrl.u32 %v112_v4, 30 }
  0x2b   :  { %v114_v6 = vshll.u32 %v113_v5, 30  ;;  %v137_v26 = vsub.s32 4, %v113_v5 }
  0x2d   :  { %v115_v7 = vsub.s32 %v111_v3, %v114_v6  ;;  %v138_v29 = vsel %vm53_vm8, %v137_v26, %v113_v5 }
  0x2e   :  { %v140_v32 = vsel %vm52_vm9, 0, %v138_v29 }
  0x2f   :  { %v117_v8 = vsub.s32 0, %v115_v7  ;;  %v144_v33 = vadd.s32 3, %v140_v32  ;;  %v248_v35 = vand.u32 3, %v140_v32 }
  0x31   :  { %v285_v9 = vmin.u32 %v117_v8, %v115_v7  ;;  %v145_v34 = vand.u32 3, %v144_v33  ;;  %vm253_vm11 = vcmp.eq.s32.totalorder %v248_v35, 2  ;;  %vm250_vm13 = vcmp.eq.s32.totalorder %v248_v35, 0 }
  0x32   :  { %vm249_vm15 = vcmp.lt.s32.totalorder %v248_v35, 2 }
  0x33   :  { %v119_v10 = vclz %v285_v9  ;;  %vm150_vm10 = vcmp.eq.s32.totalorder %v145_v34, 2  ;;  %vm147_vm12 = vcmp.eq.s32.totalorder %v145_v34, 0  ;;  %vm146_vm14 = vcmp.lt.s32.totalorder %v145_v34, 2 }
  0x35   :  { %v286_v12 = vadd.s32 4294967294, %v119_v10 }
  0x37   :  { %vm287_vm7 = vcmp.lt.s32.totalorder %v286_v12, 0 }
  0x38   :  { %v122_v14 = vsel %vm287_vm7, 0, %v286_v12 }
  0x39   :  { %v123_v16 = vsub.s32 32, %v122_v14  ;;  %v124_v17 = vshll.u32 %v115_v7, %v122_v14  ;;  %v127_v18 = vsub.s32 4294967266, %v122_v14 }
  0x3b   :  { %v125_v19 = vshrl.u32 %v107_v13, %v123_v16  ;;  %v128_v20 = vadd.s32 127, %v127_v18 }
  0x3d   :  { %v126_v21 = vor.u32 %v125_v19, %v124_v17  ;;  %v129_v22 = vshll.u32 %v128_v20, 23 }
  0x3f   :  { %v130_v23 = vor.u32 4788187, %v129_v22  ;;  %v133_v24 = vcvt.s32.f32 %v126_v21 }
  0x41   :  { %v131_v25 = vand.u32 2147483647, %v130_v23 }
  0x43   :  { %v134_v27 = vmul.f32 %v133_v24, %v131_v25 }
  0x45   :  { %v135_v28 = vxor.u32 2147483648, %v134_v27 }
  0x47   :  { %v136_v30 = vsel %vm53_vm8, %v135_v28, %v134_v27 }
  0x48   :  { %v139_v31 = vsel %vm52_vm9, %v371_v11, %v136_v30 }
  0x49   :  { %306 = vcosq.f32 %v139_v31 }
  0x4a   :  { %308 = vsinq.f32 %v139_v31 }
  0x53   :  { %v307_v36 = vpop.eup %306 }
  0x54   :  { %v309_v38 = vpop.eup %308  ;;  %v151_v39 = vxor.u32 2147483648, %v307_v36 }
  0x55   :  { %v148_v15 = vxor.u32 2147483648, %v309_v38 }
  0x56   :  { %v152_v40 = vsel %vm150_vm10, %v151_v39, %v309_v38  ;;  %v255_v41 = vsel %vm253_vm11, %v151_v39, %v309_v38 }
  0x57   :  { %v149_v42 = vsel %vm147_vm12, %v307_v36, %v148_v15  ;;  %v252_v43 = vsel %vm250_vm13, %v307_v36, %v148_v15 }
  0x58   :  { %v153_v44 = vsel %vm146_vm14, %v149_v42, %v152_v40  ;;  %v256_v45 = vsel %vm249_vm15, %v252_v43, %v255_v41 }
  0x59   :  { %v154_v46 = vsel %vm143_vm0, nan, %v153_v44  ;;  %v257_v1 = vsel %vm143_vm0, nan, %v256_v45 }
  0x5a   :  { %v260_v47 = vsel %vm43_vm1, %v154_v46, %v257_v1 }
  0x7a   :  { %v25_v48 = vpop.permute.xlu0 %24 }
  0x7b   :  { %v261_v49 = vmul.f32 %v260_v47, %v25_v48 }
  0x7d   :  { %264 = vst.msk [vmem:[#allocation2] sm:$0xff] %vm263_vm2, %v261_v49 }
  0x7e   :  { %v32_v50 = vpop.permute.xlu0 %31 }
  0x7f   :  { %v262_v51 = vmul.f32 %v260_v47, %v32_v50 }
  0x81   :  { %265 = vst.msk [vmem:[#allocation2 + $0x8] sm:$0xff] %vm263_vm2, %v262_v51 }
  0x82   :  { %321 = shalt.err (!%p318_p4)
}
  0x83   :  { %s322_s18 = scalar_lea.hbm %s408_s3, 256 }
  0x84   :  { %p323_p5 = scmp.ne.s32.totalorder %s408_s3, %s322_s18  ;;  %p326_p6 = scmp.lt.u32.totalorder %s322_s18, %s408_s3 }
  0x86   :  { %p328_p7 = pnand %p326_p6, %p323_p5 }
  0x88   :  { %331 = shalt.err (!%p328_p7)
}
  0x89   :  { %s342_s23 = smov 128   ;;  %s343_s24 = smov 8  }
  0x8a   :  { %277 = dma.vmem_to_hbm [thread:$0]  %s272_s2, 256, %s408_s3, [#allocation3], %s342_s23, %s342_s23, %s343_s24  }
  0x8b   :  { %332 = dma.done.wait [#allocation3], 256  }
  0x8c   :  { %333 = vsyncadd [#allocation3], 4294967040 }
  0x8d   :  { %281 = vsyncpa [#allocation3], 1 }

</bundles_post_ra>
